<compile_context>
chip_gen: v6e
topology: v6e:2x2x1
jax: 0.10.0
libtpu: 0.0.40
codegen_flags: <defaults>
</compile_context>

<pallas_src>
import functools

import jax
import jax.numpy as jnp
import numpy as np
from jax import lax
from jax.experimental import pallas as pl
from jax.experimental.pallas import tpu as pltpu


# ----------------------------------------------------------------------------
# One-time calibration of pltpu.roll's rotation convention (defensive: makes
# the tap shifts correct regardless of the rotate direction Mosaic implements).
# ----------------------------------------------------------------------------
@functools.lru_cache(maxsize=None)
def _roll_is_jnp_convention() -> bool:
    """True if pltpu.roll(x, s, ax) == jnp.roll(x, s, ax), i.e. out[i]=in[i-s]."""
    def kernel(x_ref, o_ref):
        o_ref[...] = pltpu.roll(x_ref[...], shift=1, axis=1)

    x = jnp.broadcast_to(jnp.arange(128, dtype=jnp.float32), (8, 128))
    out = pl.pallas_call(
        kernel, out_shape=jax.ShapeDtypeStruct((8, 128), jnp.float32))(x)
    first = float(jax.device_get(out)[0, 0])
    if first == 127.0:
        return True
    if first == 1.0:
        return False
    raise RuntimeError(f"unexpected pltpu.roll behaviour (out[0,0]={first})")


# ----------------------------------------------------------------------------
# Fused kernel: conv1+BN1+ReLU -> conv2+BN2+ReLU -> conv3+BN3 -> + x
# One grid step = one image.  Layout: channels in sublanes, H*W in lanes.
# ----------------------------------------------------------------------------
def _fused_irb_kernel(x_ref, masks_ref, w1_ref, b1_ref, w2_ref, b2_ref,
                      w3_ref, b3_ref, o_ref, *, shifts):
    """
    x_ref    : (1, Cin, HWp)       image (NCHW reshaped, spatial lane-padded)
    masks_ref: (K*K, 1, HWp)       0/1 border masks (= conv2 zero padding)
    w1_ref   : (HIDP, Cin)         1x1 expand conv, BN1 folded
    b1_ref   : (HIDP, 1)
    w2_ref   : (K*K, HIDP, HIDP)   KxK conv taps (out, in), BN2 folded
    b2_ref   : (HIDP, 1)
    w3_ref   : (Cout, HIDP)        1x1 project conv, BN3 folded
    b3_ref   : (Cout, 1)
    o_ref    : (1, Cout, HWp)
    """
    x = x_ref[0]                                                   # (Cin, HWp)

    # ---- conv1 (1x1) + BN1 + ReLU ------------------------------------------
    h1 = jnp.dot(w1_ref[...], x, preferred_element_type=jnp.float32)
    h1 = jnp.maximum(h1 + b1_ref[...], 0.0)                        # (HIDP, HWp)

    # ---- conv2 (KxK) + BN2 + ReLU: lane-rolled, border-masked matmuls -------
    # acc is small enough to stay in vregs: tap accumulation is register adds.
    acc = jnp.zeros_like(h1)
    for t, amt in enumerate(shifts):
        v = h1 if amt == 0 else pltpu.roll(h1, shift=amt, axis=1)  # XLU
        v = v * masks_ref[t]                                       # zero-pad border
        acc = acc + jnp.dot(w2_ref[t], v, preferred_element_type=jnp.float32)
    h2 = jnp.maximum(acc + b2_ref[...], 0.0)                       # (HIDP, HWp)

    # ---- conv3 (1x1) + BN3 + residual add ------------------------------------
    y = jnp.dot(w3_ref[...], h2, preferred_element_type=jnp.float32) + b3_ref[...]
    o_ref[0] = (y + x).astype(o_ref.dtype)


# ----------------------------------------------------------------------------
# Parameter prep: fold BN (eval mode) into conv weights/biases; pad hidden dim
# to a multiple of 8 sublanes (NOT 128 lanes) for the transposed layout.
# ----------------------------------------------------------------------------
def _prep_params(params, k, hidp, eps=1e-5):
    hid = params["w1"].shape[0]
    ph = hidp - hid

    g1, be1, m1, v1 = params["bn1"]
    s1 = g1 / jnp.sqrt(v1 + eps)
    w1 = params["w1"][:, :, 0, 0] * s1[:, None]                     # (hid, cin)
    b1 = (params["b1"] - m1) * s1 + be1                             # (hid,)
    w1 = jnp.pad(w1, ((0, ph), (0, 0)))                             # (hidp, cin)
    b1 = jnp.pad(b1, (0, ph))[:, None]                              # (hidp, 1)

    g2, be2, m2, v2 = params["bn2"]
    s2 = g2 / jnp.sqrt(v2 + eps)
    w2 = params["w2"] * s2[:, None, None, None]                     # (hid, hid, k, k)
    w2 = jnp.transpose(w2, (2, 3, 0, 1)).reshape(k * k, hid, hid)   # (tap, out, in)
    w2 = jnp.pad(w2, ((0, 0), (0, ph), (0, ph)))                    # (k*k, hidp, hidp)
    b2 = jnp.pad((params["b2"] - m2) * s2 + be2, (0, ph))[:, None]  # (hidp, 1)

    g3, be3, m3, v3 = params["bn3"]
    s3 = g3 / jnp.sqrt(v3 + eps)
    w3 = params["w3"][:, :, 0, 0] * s3[:, None]                     # (cout, hid)
    w3 = jnp.pad(w3, ((0, 0), (0, ph)))                             # (cout, hidp)
    b3 = ((params["b3"] - m3) * s3 + be3)[:, None]                  # (cout, 1)
    return w1, b1, w2, b2, w3, b3


def _border_masks(h, w, k, pad, hwp):
    """0/1 masks over the flattened spatial axis implementing conv2 zero padding."""
    idx = np.arange(hwp)
    yy, xx = idx // w, idx % w
    masks = np.zeros((k * k, 1, hwp), np.float32)
    for dy in range(k):
        for dx in range(k):
            r, c = dy - pad, dx - pad
            ok = (yy + r >= 0) & (yy + r < h) & (xx + c >= 0) & (xx + c < w)
            masks[dy * k + dx, 0, :] = ok.astype(np.float32)
    return jnp.asarray(masks)


# ----------------------------------------------------------------------------
# Wrapper
# ----------------------------------------------------------------------------
def inverted_residual_block(x_nchw, params, *, kernel_size, stride, padding):
    """Forward pass matching the PyTorch module (BatchNorm in eval mode)."""
    n, cin, h, w = x_nchw.shape
    hid = params["w1"].shape[0]
    cout = params["w3"].shape[0]
    k = kernel_size
    ho = (h + 2 * padding - k) // stride + 1
    wo = (w + 2 * padding - k) // stride + 1
    if (ho, wo) != (h, w) or cout != cin:
        raise ValueError("residual add requires conv2 to preserve the spatial size "
                         "and out_channels == in_channels (as in `x + identity`)")
    if stride != 1:
        raise ValueError("fused kernel implements the (only shape-consistent) stride=1 case")

    hw = h * w
    hwp = ((hw + 127) // 128) * 128       # lane-dense flattened spatial extent
    hidp = ((hid + 7) // 8) * 8           # sublane-aligned expand dim (not 128)

    w1, b1, w2, b2, w3, b3 = _prep_params(params, k, hidp)
    masks = _border_masks(h, w, k, padding, hwp)

    # Static lane-roll amount per conv2 tap: output lane i reads h1 lane i + s.
    jnp_like = _roll_is_jnp_convention()
    shifts = []
    for dy in range(k):
        for dx in range(k):
            s = (dy - padding) * w + (dx - padding)
            shifts.append(int((-s) % hwp) if jnp_like else int(s % hwp))
    shifts = tuple(shifts)

    x3 = x_nchw.astype(jnp.float32).reshape(n, cin, hw)   # NCHW -> (n, C, H*W), no transpose
    if hwp != hw:
        x3 = jnp.pad(x3, ((0, 0), (0, 0), (0, hwp - hw)))

    kernel = functools.partial(_fused_irb_kernel, shifts=shifts)

    flops = n * 2 * hwp * (hidp * cin + k * k * hidp * hidp + cout * hidp)
    weight_bytes = sum(int(a.size) * 4 for a in (w1, b1, w2, b2, w3, b3, masks))
    bytes_accessed = n * hwp * (cin + cout) * 4 + weight_bytes

    out3 = pl.pallas_call(
        kernel,
        out_shape=jax.ShapeDtypeStruct((n, cout, hwp), jnp.float32),
        grid_spec=pltpu.PrefetchScalarGridSpec(
            num_scalar_prefetch=0,
            grid=(n,),
            in_specs=[
                pl.BlockSpec((1, cin, hwp), lambda b: (b, 0, 0)),        # x (per image)
                pl.BlockSpec((k * k, 1, hwp), lambda b: (0, 0, 0)),      # border masks
                pl.BlockSpec((hidp, cin), lambda b: (0, 0)),             # w1 (resident)
                pl.BlockSpec((hidp, 1), lambda b: (0, 0)),               # b1
                pl.BlockSpec((k * k, hidp, hidp), lambda b: (0, 0, 0)),  # w2 (resident)
                pl.BlockSpec((hidp, 1), lambda b: (0, 0)),               # b2
                pl.BlockSpec((cout, hidp), lambda b: (0, 0)),            # w3 (resident)
                pl.BlockSpec((cout, 1), lambda b: (0, 0)),               # b3
            ],
            out_specs=pl.BlockSpec((1, cout, hwp), lambda b: (b, 0, 0)),
        ),
        compiler_params=pltpu.CompilerParams(
            dimension_semantics=("parallel",),          # megacore / v7x 2-TC sharding
            vmem_limit_bytes=32 * 1024 * 1024,          # explicit; safe on v5e/v6e/v7x
        ),
        cost_estimate=pl.CostEstimate(flops=flops, transcendentals=0,
                                      bytes_accessed=bytes_accessed),
    )(x3, masks, w1, b1, w2, b2, w3, b3)

    out = out3[:, :, :hw] if hwp != hw else out3
    return out.reshape(n, cout, h, w)                   # already NCHW


# ----------------------------------------------------------------------------
# Pure-JAX reference (lax convolutions) for correctness check
# ----------------------------------------------------------------------------
def _reference(x_nchw, params, *, kernel_size, stride, padding, eps=1e-5):
    def conv(x, w, b, s, p):
        wk = jnp.transpose(w, (2, 3, 1, 0))  # OIHW -> HWIO
        y = lax.conv_general_dilated(
            x, wk, (s, s), [(p, p), (p, p)],
            dimension_numbers=("NHWC", "HWIO", "NHWC"))
        return y + b[None, None, None, :]

    def bn(x, stats):
        gamma, beta, mean, var = stats
        return (x - mean) / jnp.sqrt(var + eps) * gamma + beta

    x = jnp.transpose(x_nchw, (0, 2, 3, 1)).astype(jnp.float32)
    identity = x
    y = jnp.maximum(bn(conv(x, params["w1"], params["b1"], 1, 0), params["bn1"]), 0.0)
    y = jnp.maximum(bn(conv(y, params["w2"], params["b2"], stride, padding), params["bn2"]), 0.0)
    y = bn(conv(y, params["w3"], params["b3"], 1, 0), params["bn3"])
    y = y + identity
    return jnp.transpose(y, (0, 3, 1, 2))


# ----------------------------------------------------------------------------
def _init_params(key, cin, cout, hid, k):
    ks = jax.random.split(key, 12)

    def bn_stats(k0, c):
        k_a, k_b, k_c, k_d = jax.random.split(k0, 4)
        gamma = 0.5 + jax.random.uniform(k_a, (c,), jnp.float32)
        beta = 0.1 * jax.random.normal(k_b, (c,), jnp.float32)
        mean = 0.1 * jax.random.normal(k_c, (c,), jnp.float32)
        var = 0.5 + jax.random.uniform(k_d, (c,), jnp.float32)
        return (gamma, beta, mean, var)

    return {
        "w1": 0.1 * jax.random.normal(ks[0], (hid, cin, 1, 1), jnp.float32),
        "b1": 0.1 * jax.random.normal(ks[1], (hid,), jnp.float32),
        "bn1": bn_stats(ks[2], hid),
        "w2": 0.1 * jax.random.normal(ks[3], (hid, hid, k, k), jnp.float32),
        "b2": 0.1 * jax.random.normal(ks[4], (hid,), jnp.float32),
        "bn2": bn_stats(ks[5], hid),
        "w3": 0.1 * jax.random.normal(ks[6], (cout, hid, 1, 1), jnp.float32),
        "b3": 0.1 * jax.random.normal(ks[7], (cout,), jnp.float32),
        "bn3": bn_stats(ks[8], cout),
    }


if __name__ == "__main__":
    # Small config consistent with the module: in=out=4 channels, expand_ratio=2,
    # kernel=3, stride=1, padding=1 (residual add requires matching shapes).
    N, CIN, H, W = 2, 4, 16, 16
    EXPAND, K, STRIDE, PAD = 2, 3, 1, 1
    COUT, HID = CIN, CIN * EXPAND

    key = jax.random.PRNGKey(0)
    kx, kp = jax.random.split(key)
    x = jax.random.normal(kx, (N, CIN, H, W), jnp.float32)
    params = _init_params(kp, CIN, COUT, HID, K)

    fwd = functools.partial(inverted_residual_block,
                            kernel_size=K, stride=STRIDE, padding=PAD)
    out = jax.block_until_ready(fwd(x, params))

    ref = _reference(x, params, kernel_size=K, stride=STRIDE, padding=PAD)
    np.testing.assert_allclose(np.asarray(out), np.asarray(ref), rtol=1e-4, atol=1e-4)

    print("KERNEL_OK")
</pallas_src>

<mosaic_0001>
module attributes {stable_mosaic.version = 11 : i64} {
  func.func @kernel(%arg0: memref<8x128xf32, #tpu.memory_space<vmem>>, %arg1: memref<8x128xf32, #tpu.memory_space<vmem>>) attributes {dimension_semantics = [], scalar_prefetch = 0 : i64, scratch_operands = 0 : i64, tpu.core_type = #tpu.core_type<tc>} {
    %c0 = arith.constant 0 : index
    %c0_0 = arith.constant 0 : index
    %0 = vector.load %arg0[%c0, %c0_0] : memref<8x128xf32, #tpu.memory_space<vmem>>, vector<8x128xf32>
    %c1_i32 = arith.constant 1 : i32
    %1 = tpu.dynamic_rotate %0 by %c1_i32 dim 1 : vector<8x128xf32>, i32 -> vector<8x128xf32>
    %c0_1 = arith.constant 0 : index
    %c0_2 = arith.constant 0 : index
    %2 = vector.load %arg1[%c0_1, %c0_2] : memref<8x128xf32, #tpu.memory_space<vmem>>, vector<8x128xf32>
    tpu.vector_store %arg1[%c0_1, %c0_2], %1 {strides = array<i32>} : memref<8x128xf32, #tpu.memory_space<vmem>>, vector<8x128xf32>,
    return
  }
}

</mosaic_0001>

<bundles_post_ra>
// kernel: tpu_custom_call.1
= control target key start
LH: loop header
LB: loop body
LE: loop exit
PB: predicated region body
PF: predicated region fallthrough
CT: control target
= control target key end

     0   :  { %6 = vsyncpa [#allocation3], 0  ;;  %s106_s0 = inlined_call_operand.hbm [shape: f32[8,128], index: 0, kind: input, shape index: {}]   ;;  %s107_s1 = inlined_call_operand.hbm [shape: f32[8,128], index: 1, kind: output, shape index: {}]  }
   0x1   :  { %7 = vsyncpa [#allocation4], 0  ;;  %s87_s6 = smov [#allocation2]  }
   0x2   :  { %s14_s7 = sshll.u32 %s87_s6, 4  ;;  %s15_s7 = int_to_ptr.vmem [resolvable:$true] %s14_s7 }
   0x3   :  { %s51_s8 = scalar_lea.vmem %s15_s7, 128  ;;  %p56_p1 = scmp.lt.s32.totalorder %s15_s7, %s15_s7 }
   0x4   :  { %p52_p0 = scmp.ne.s32.totalorder %s15_s7, %s51_s8  ;;  %p57_p2 = scmp.lt.s32.totalorder %s51_s8, %s51_s8 }
   0x6   :  { %p58_p3 = por %p57_p2, %p56_p1 }
   0x8   :  { %p59_p4 = pnand %p58_p3, %p52_p0 }
   0xa   :  { %62 = shalt.err (!%p59_p4)
}
   0xb   :  { %17 = dma.hbm_to_vmem [thread:$0]  %s106_s0, 128, %s15_s7, [#allocation3]  }
   0xc   :  { %83 = dma.done.wait [#allocation3], 128  }
   0xd   :  { %84 = vsyncadd [#allocation3], 4294967168  ;;  %v21_v0 = vld [vmem:[#allocation2] sm:$0xff]  ;;  %s88_s11 = smov 1   ;;  %s89_s12 = smov [#allocation5]  }
   0xe   :  { %22 = vrot.lane.b32.xlu0 %v21_v0, %s88_s11  ;;  %s31_s13 = sshll.u32 %s89_s12, 4  ;;  %s32_s13 = int_to_ptr.vmem [resolvable:$true] %s31_s13 }
   0xf   :  { %s63_s14 = scalar_lea.vmem %s32_s13, 128  ;;  %p68_p6 = scmp.lt.s32.totalorder %s32_s13, %s32_s13 }
  0x10   :  { %p64_p5 = scmp.ne.s32.totalorder %s32_s13, %s63_s14  ;;  %p69_p7 = scmp.lt.s32.totalorder %s63_s14, %s63_s14 }
  0x12   :  { %p70_p8 = por %p69_p7, %p68_p6 }
  0x14   :  { %p71_p9 = pnand %p70_p8, %p64_p5 }
  0x80   :  { %v23_v1 = vpop.permute.xlu0 %22 }
  0x81   :  { %24 = vst [vmem:[#allocation5] sm:$0xff] %v23_v1 }
  0x82   :  { %74 = shalt.err (!%p71_p9)
}
  0x83   :  { %34 = dma.vmem_to_hbm [thread:$0]  %s32_s13, 128, %s107_s1, [#allocation4]  }
  0x84   :  { %85 = dma.done.wait [#allocation4], 128  }
  0x85   :  { %86 = vsyncadd [#allocation4], 4294967168 }
  0x86   :  { %38 = vsyncpa [#allocation3], 1 }
  0x87   :  { %39 = vsyncpa [#allocation4], 1 }

</bundles_post_ra>
